<compile_context>
chip_gen: v6e
topology: v6e:2x2x1
jax: 0.10.0
libtpu: 0.0.40
codegen_flags: <defaults>
</compile_context>

<pallas_src>
import functools

import jax
import jax.numpy as jnp
from jax.experimental import pallas as pl
from jax.experimental.pallas import tpu as pltpu

INPUT_DIM = 16
HIDDEN_DIMS = [128, 256, 512]
OUTPUT_DIM = 512

DEFAULT_TILE_B = 1024   # amortizes per-step overhead; fits scoped VMEM on v5e/v6e/v7x
BATCH_ALIGN = 16        # sublane alignment safe for both f32 and bf16 tiles


def _round_up(x, m):
    return ((x + m - 1) // m) * m


def key_embedding_kernel(x_ref,
                         w1_ref, b1_ref,
                         w2_ref, b2_ref,
                         w3_ref, b3_ref,
                         w4_ref, b4_ref,
                         o_ref):
    """Fused 4-layer MLP forward on one batch tile (all weights resident in VMEM)."""
    cdt = w1_ref.dtype  # MXU operand dtype (bf16); accumulation stays f32

    h = jnp.dot(x_ref[...].astype(cdt), w1_ref[...],
                preferred_element_type=jnp.float32)
    h = jnp.maximum(h + b1_ref[...], 0.0)

    h = jnp.dot(h.astype(cdt), w2_ref[...], preferred_element_type=jnp.float32)
    h = jnp.maximum(h + b2_ref[...], 0.0)

    # TODO(synk): on v7x, layers 3-4 (~89% of FLOPs) could use fp8 operands with per-tensor
    # scales for up to ~1.7x; skipped to keep numerics identical to the PyTorch module.
    h = jnp.dot(h.astype(cdt), w3_ref[...], preferred_element_type=jnp.float32)
    h = jnp.maximum(h + b3_ref[...], 0.0)

    out = jnp.dot(h.astype(cdt), w4_ref[...], preferred_element_type=jnp.float32)
    o_ref[...] = (out + b4_ref[...]).astype(o_ref.dtype)


def _resident_spec(shape):
    # Same full block at every grid step -> resident in VMEM.  Single-buffered:
    # double-buffering a constant-index block wastes VMEM/DMA machinery for no benefit.
    return pl.BlockSpec(shape, lambda i: (0, 0), pipeline_mode=pl.Buffered(1))


@functools.partial(jax.jit, static_argnames=("tile_b", "compute_dtype", "out_dtype"))
def key_embedding_forward(x, params, *, tile_b=DEFAULT_TILE_B,
                          compute_dtype=jnp.bfloat16, out_dtype=jnp.float32):
    """x: [B, INPUT_DIM] float32.  params: dict of f32 weights/biases (see init_params)."""
    B, D = x.shape
    assert D == INPUT_DIM

    # Batch tiling:
    #  * never larger than the (aligned) batch,
    #  * >= 2 balanced grid steps whenever the batch allows it (uses v7x's 2nd TensorCore),
    #  * sublane-aligned so ragged batches only need zero padding + a final slice.
    tile_b = min(tile_b, _round_up(B, BATCH_ALIGN))
    if B >= 2 * BATCH_ALIGN:
        tile_b = min(tile_b, _round_up(pl.cdiv(B, 2), BATCH_ALIGN))
    tile_b = _round_up(tile_b, BATCH_ALIGN)
    grid_b = pl.cdiv(B, tile_b)
    padded_b = grid_b * tile_b

    # x stays unpadded f32 [*, 16]; only the batch dim is padded, and only when ragged.
    xp = x if padded_b == B else jnp.pad(x, ((0, padded_b - B), (0, 0)))

    # Weights as [in, out] (transpose of torch's [out, in]); bf16 MXU operands, f32 biases.
    w1 = params["w1"].astype(compute_dtype)
    w2 = params["w2"].astype(compute_dtype)
    w3 = params["w3"].astype(compute_dtype)
    w4 = params["w4"].astype(compute_dtype)
    b1, b2, b3, b4 = params["b1"], params["b2"], params["b3"], params["b4"]

    # VMEM budget: x + out double-buffered, ~1 MiB resident weights, f32/bf16 activation
    # scratch.  ~10 KiB per batch row covers it with headroom on every generation.
    vmem_limit = int(min(64 << 20, max(16 << 20, (6 << 20) + tile_b * 10 * 1024)))

    out = pl.pallas_call(
        key_embedding_kernel,
        out_shape=jax.ShapeDtypeStruct((padded_b, OUTPUT_DIM), out_dtype),
        grid_spec=pltpu.PrefetchScalarGridSpec(
            num_scalar_prefetch=0,
            grid=(grid_b,),
            in_specs=[
                pl.BlockSpec((tile_b, INPUT_DIM), lambda i: (i, 0)),  # x tile (f32)
                _resident_spec(w1.shape), _resident_spec(b1.shape),
                _resident_spec(w2.shape), _resident_spec(b2.shape),
                _resident_spec(w3.shape), _resident_spec(b3.shape),
                _resident_spec(w4.shape), _resident_spec(b4.shape),
            ],
            out_specs=pl.BlockSpec((tile_b, OUTPUT_DIM), lambda i: (i, 0)),
        ),
        compiler_params=pltpu.CompilerParams(
            dimension_semantics=("parallel",),   # batch axis shards across v7x TCs
            vmem_limit_bytes=vmem_limit),
    )(xp, w1, b1, w2, b2, w3, b3, w4, b4)

    # Slice only when the batch was actually padded (avoids an extra HBM pass otherwise).
    return out if padded_b == B else out[:B]


def init_params(key):
    """Deterministic parameter init (PyTorch-Linear-style uniform bounds), f32 storage."""
    dims = [INPUT_DIM] + HIDDEN_DIMS + [OUTPUT_DIM]
    params = {}
    for li, (din, dout) in enumerate(zip(dims[:-1], dims[1:]), start=1):
        key, kw, kb = jax.random.split(key, 3)
        bound = 1.0 / jnp.sqrt(din)
        # Stored as [in, out] (transpose of torch's [out, in]) so the kernel does x @ W.
        params[f"w{li}"] = jax.random.uniform(
            kw, (din, dout), jnp.float32, minval=-bound, maxval=bound)
        params[f"b{li}"] = jax.random.uniform(
            kb, (1, dout), jnp.float32, minval=-bound, maxval=bound)
    return params


def reference_forward(x, params, compute_dtype=jnp.bfloat16):
    """Pure-JAX reference with the same mixed-precision recipe as the kernel."""
    def linear(h, w, b):
        return jnp.dot(h.astype(compute_dtype), w.astype(compute_dtype),
                       preferred_element_type=jnp.float32) + b
    h = jnp.maximum(linear(x, params["w1"], params["b1"]), 0.0)
    h = jnp.maximum(linear(h, params["w2"], params["b2"]), 0.0)
    h = jnp.maximum(linear(h, params["w3"], params["b3"]), 0.0)
    return linear(h, params["w4"], params["b4"])


if __name__ == "__main__":
    key = jax.random.PRNGKey(0)
    key, kx1, kx2 = jax.random.split(key, 3)
    params = init_params(key)

    # Small demo batch (16 key vectors of dim 16): single grid step, no padding/slicing.
    x_small = jax.random.normal(kx1, (16, INPUT_DIM), jnp.float32)
    out_small = jax.block_until_ready(key_embedding_forward(x_small, params))
    ref_small = reference_forward(x_small, params)
    assert out_small.shape == (16, OUTPUT_DIM)
    assert jnp.allclose(out_small, ref_small, atol=5e-3, rtol=5e-3), "mismatch (small)"

    # Ragged batch exercising the multi-tile grid + batch-pad/slice path.
    x_big = jax.random.normal(kx2, (200, INPUT_DIM), jnp.float32)
    out_big = jax.block_until_ready(key_embedding_forward(x_big, params, tile_b=64))
    ref_big = reference_forward(x_big, params)
    assert out_big.shape == (200, OUTPUT_DIM)
    assert jnp.allclose(out_big, ref_big, atol=5e-3, rtol=5e-3), "mismatch (ragged)"

    # Optional bf16 output path (halves writeback on v6e's bandwidth-bound regime).
    out_bf16 = jax.block_until_ready(
        key_embedding_forward(x_big, params, tile_b=64, out_dtype=jnp.bfloat16))
    assert out_bf16.dtype == jnp.bfloat16
    assert jnp.allclose(out_bf16.astype(jnp.float32), ref_big,
                        atol=3e-2, rtol=3e-2), "mismatch (bf16 out)"

    print("KERNEL_OK")
</pallas_src>

<mosaic_0001>
module attributes {stable_mosaic.version = 11 : i64} {
  func.func @key_embedding_kernel(%arg0: i32, %arg1: memref<16x16xf32, #tpu.memory_space<vmem>>, %arg2: memref<16x128xbf16, #tpu.memory_space<vmem>>, %arg3: memref<1x128xf32, #tpu.memory_space<vmem>>, %arg4: memref<128x256xbf16, #tpu.memory_space<vmem>>, %arg5: memref<1x256xf32, #tpu.memory_space<vmem>>, %arg6: memref<256x512xbf16, #tpu.memory_space<vmem>>, %arg7: memref<1x512xf32, #tpu.memory_space<vmem>>, %arg8: memref<512x512xbf16, #tpu.memory_space<vmem>>, %arg9: memref<1x512xf32, #tpu.memory_space<vmem>>, %arg10: memref<16x512xf32, #tpu.memory_space<vmem>>) attributes {dimension_semantics = [#tpu.dimension_semantics<parallel>], iteration_bounds = array<i64: 1>, scalar_prefetch = 0 : i64, scratch_operands = 0 : i64, tpu.core_type = #tpu.core_type<tc>, window_params = [{transform_indices = @transform_0, window_bounds = array<i64: 16, 16>}, {pipeline_mode = #tpu.pipeline_mode<synchronous>, transform_indices = @transform_1, window_bounds = array<i64: 16, 128>}, {pipeline_mode = #tpu.pipeline_mode<synchronous>, transform_indices = @transform_2, window_bounds = array<i64: 1, 128>}, {pipeline_mode = #tpu.pipeline_mode<synchronous>, transform_indices = @transform_3, window_bounds = array<i64: 128, 256>}, {pipeline_mode = #tpu.pipeline_mode<synchronous>, transform_indices = @transform_4, window_bounds = array<i64: 1, 256>}, {pipeline_mode = #tpu.pipeline_mode<synchronous>, transform_indices = @transform_5, window_bounds = array<i64: 256, 512>}, {pipeline_mode = #tpu.pipeline_mode<synchronous>, transform_indices = @transform_6, window_bounds = array<i64: 1, 512>}, {pipeline_mode = #tpu.pipeline_mode<synchronous>, transform_indices = @transform_7, window_bounds = array<i64: 512, 512>}, {pipeline_mode = #tpu.pipeline_mode<synchronous>, transform_indices = @transform_8, window_bounds = array<i64: 1, 512>}, {transform_indices = @transform_9, window_bounds = array<i64: 16, 512>}]} {
    %c0 = arith.constant 0 : index
    %c0_0 = arith.constant 0 : index
    %0 = vector.load %arg1[%c0, %c0_0] : memref<16x16xf32, #tpu.memory_space<vmem>>, vector<16x16xf32>
    %1 = arith.truncf %0 : vector<16x16xf32> to vector<16x16xbf16>
    %c0_1 = arith.constant 0 : index
    %c0_2 = arith.constant 0 : index
    %2 = vector.load %arg2[%c0_1, %c0_2] : memref<16x128xbf16, #tpu.memory_space<vmem>>, vector<16x128xbf16>
    %cst = arith.constant dense<0.000000e+00> : vector<16x128xf32>
    %3 = tpu.matmul %1, %2, %cst {dimension_numbers = #tpu.dot_dimension_numbers<[1], [0], [0], [1], [0, 0, 1, 1], [], []>} : vector<16x16xbf16>, vector<16x128xbf16>, vector<16x128xf32> -> vector<16x128xf32>
    %c0_3 = arith.constant 0 : index
    %c0_4 = arith.constant 0 : index
    %4 = vector.load %arg3[%c0_3, %c0_4] : memref<1x128xf32, #tpu.memory_space<vmem>>, vector<1x128xf32>
    %5 = vector.broadcast %4 : vector<1x128xf32> to vector<16x128xf32>
    %6 = arith.addf %3, %5 : vector<16x128xf32>
    %cst_5 = arith.constant 0.000000e+00 : f32
    %7 = vector.broadcast %cst_5 : f32 to vector<16x128xf32>
    %8 = arith.maximumf %6, %7 : vector<16x128xf32>
    %9 = arith.truncf %8 : vector<16x128xf32> to vector<16x128xbf16>
    %c0_6 = arith.constant 0 : index
    %c0_7 = arith.constant 0 : index
    %10 = vector.load %arg4[%c0_6, %c0_7] : memref<128x256xbf16, #tpu.memory_space<vmem>>, vector<128x256xbf16>
    %cst_8 = arith.constant dense<0.000000e+00> : vector<16x256xf32>
    %11 = tpu.matmul %9, %10, %cst_8 {dimension_numbers = #tpu.dot_dimension_numbers<[1], [0], [0], [1], [0, 0, 1, 1], [], []>} : vector<16x128xbf16>, vector<128x256xbf16>, vector<16x256xf32> -> vector<16x256xf32>
    %c0_9 = arith.constant 0 : index
    %c0_10 = arith.constant 0 : index
    %12 = vector.load %arg5[%c0_9, %c0_10] : memref<1x256xf32, #tpu.memory_space<vmem>>, vector<1x256xf32>
    %13 = vector.broadcast %12 : vector<1x256xf32> to vector<16x256xf32>
    %14 = arith.addf %11, %13 : vector<16x256xf32>
    %cst_11 = arith.constant 0.000000e+00 : f32
    %15 = vector.broadcast %cst_11 : f32 to vector<16x256xf32>
    %16 = arith.maximumf %14, %15 : vector<16x256xf32>
    %17 = arith.truncf %16 : vector<16x256xf32> to vector<16x256xbf16>
    %c0_12 = arith.constant 0 : index
    %c0_13 = arith.constant 0 : index
    %18 = vector.load %arg6[%c0_12, %c0_13] : memref<256x512xbf16, #tpu.memory_space<vmem>>, vector<256x512xbf16>
    %cst_14 = arith.constant dense<0.000000e+00> : vector<16x512xf32>
    %19 = tpu.matmul %17, %18, %cst_14 {dimension_numbers = #tpu.dot_dimension_numbers<[1], [0], [0], [1], [0, 0, 1, 1], [], []>} : vector<16x256xbf16>, vector<256x512xbf16>, vector<16x512xf32> -> vector<16x512xf32>
    %c0_15 = arith.constant 0 : index
    %c0_16 = arith.constant 0 : index
    %20 = vector.load %arg7[%c0_15, %c0_16] : memref<1x512xf32, #tpu.memory_space<vmem>>, vector<1x512xf32>
    %21 = vector.broadcast %20 : vector<1x512xf32> to vector<16x512xf32>
    %22 = arith.addf %19, %21 : vector<16x512xf32>
    %cst_17 = arith.constant 0.000000e+00 : f32
    %23 = vector.broadcast %cst_17 : f32 to vector<16x512xf32>
    %24 = arith.maximumf %22, %23 : vector<16x512xf32>
    %25 = arith.truncf %24 : vector<16x512xf32> to vector<16x512xbf16>
    %c0_18 = arith.constant 0 : index
    %c0_19 = arith.constant 0 : index
    %26 = vector.load %arg8[%c0_18, %c0_19] : memref<512x512xbf16, #tpu.memory_space<vmem>>, vector<512x512xbf16>
    %cst_20 = arith.constant dense<0.000000e+00> : vector<16x512xf32>
    %27 = tpu.matmul %25, %26, %cst_20 {dimension_numbers = #tpu.dot_dimension_numbers<[1], [0], [0], [1], [0, 0, 1, 1], [], []>} : vector<16x512xbf16>, vector<512x512xbf16>, vector<16x512xf32> -> vector<16x512xf32>
    %c0_21 = arith.constant 0 : index
    %c0_22 = arith.constant 0 : index
    %28 = vector.load %arg9[%c0_21, %c0_22] : memref<1x512xf32, #tpu.memory_space<vmem>>, vector<1x512xf32>
    %29 = vector.broadcast %28 : vector<1x512xf32> to vector<16x512xf32>
    %30 = arith.addf %27, %29 : vector<16x512xf32>
    %c0_23 = arith.constant 0 : index
    %c0_24 = arith.constant 0 : index
    %31 = vector.load %arg10[%c0_23, %c0_24] : memref<16x512xf32, #tpu.memory_space<vmem>>, vector<16x512xf32>
    tpu.vector_store %arg10[%c0_23, %c0_24], %30 {strides = array<i32>} : memref<16x512xf32, #tpu.memory_space<vmem>>, vector<16x512xf32>,
    return
  }
  func.func @transform_0(%arg0: i32) -> (i32, i32) {
    %c0_i32 = arith.constant 0 : i32
    %c0_i32_0 = arith.constant 0 : i32
    return %arg0, %c0_i32 : i32, i32
  }
  func.func @transform_1(%arg0: i32) -> (i32, i32) {
    %c0_i32 = arith.constant 0 : i32
    %c0_i32_0 = arith.constant 0 : i32
    %c0_i32_1 = arith.constant 0 : i32
    return %c0_i32, %c0_i32_0 : i32, i32
  }
  func.func @transform_2(%arg0: i32) -> (i32, i32) {
    %c0_i32 = arith.constant 0 : i32
    %c0_i32_0 = arith.constant 0 : i32
    %c0_i32_1 = arith.constant 0 : i32
    return %c0_i32, %c0_i32_0 : i32, i32
  }
  func.func @transform_3(%arg0: i32) -> (i32, i32) {
    %c0_i32 = arith.constant 0 : i32
    %c0_i32_0 = arith.constant 0 : i32
    %c0_i32_1 = arith.constant 0 : i32
    return %c0_i32, %c0_i32_0 : i32, i32
  }
  func.func @transform_4(%arg0: i32) -> (i32, i32) {
    %c0_i32 = arith.constant 0 : i32
    %c0_i32_0 = arith.constant 0 : i32
    %c0_i32_1 = arith.constant 0 : i32
    return %c0_i32, %c0_i32_0 : i32, i32
  }
  func.func @transform_5(%arg0: i32) -> (i32, i32) {
    %c0_i32 = arith.constant 0 : i32
    %c0_i32_0 = arith.constant 0 : i32
    %c0_i32_1 = arith.constant 0 : i32
    return %c0_i32, %c0_i32_0 : i32, i32
  }
  func.func @transform_6(%arg0: i32) -> (i32, i32) {
    %c0_i32 = arith.constant 0 : i32
    %c0_i32_0 = arith.constant 0 : i32
    %c0_i32_1 = arith.constant 0 : i32
    return %c0_i32, %c0_i32_0 : i32, i32
  }
  func.func @transform_7(%arg0: i32) -> (i32, i32) {
    %c0_i32 = arith.constant 0 : i32
    %c0_i32_0 = arith.constant 0 : i32
    %c0_i32_1 = arith.constant 0 : i32
    return %c0_i32, %c0_i32_0 : i32, i32
  }
  func.func @transform_8(%arg0: i32) -> (i32, i32) {
    %c0_i32 = arith.constant 0 : i32
    %c0_i32_0 = arith.constant 0 : i32
    %c0_i32_1 = arith.constant 0 : i32
    return %c0_i32, %c0_i32_0 : i32, i32
  }
  func.func @transform_9(%arg0: i32) -> (i32, i32) {
    %c0_i32 = arith.constant 0 : i32
    %c0_i32_0 = arith.constant 0 : i32
    return %arg0, %c0_i32 : i32, i32
  }
}

</mosaic_0001>

<bundles_post_ra>
// kernel: key_embedding_forward.1
= control target key start
LH: loop header
LB: loop body
LE: loop exit
PB: predicated region body
PF: predicated region fallthrough
CT: control target
= control target key end

     0   :  { %v2307_v1 = vmov 0.0   ;;  %vm2308_vm0 = vmmov 0   ;;  %vm52_vm1 = vcmask 130048   ;;  %s3043_s0 = inlined_call_operand.vmem [shape: f32[16,16], index: 0, kind: input, shape index: {}]   ;;  %s3044_s1 = inlined_call_operand.vmem [shape: bf16[16,128], index: 1, kind: input, shape index: {}]   ;;  %s3045_s2 = inlined_call_operand.vmem [shape: f32[1,128], index: 2, kind: input, shape index: {}]   ;;  %s3046_s3 = inlined_call_operand.vmem [shape: bf16[128,256], index: 3, kind: input, shape index: {}]   ;;  %s3047_s4 = inlined_call_operand.vmem [shape: f32[1,256], index: 4, kind: input, shape index: {}]   ;;  %s3048_s5 = inlined_call_operand.vmem [shape: bf16[256,512], index: 5, kind: input, shape index: {}]   ;;  %s3049_s6 = inlined_call_operand.vmem [shape: f32[1,512], index: 6, kind: input, shape index: {}]   ;;  %s3050_s7 = inlined_call_operand.vmem [shape: bf16[512,512], index: 7, kind: input, shape index: {}]   ;;  %s3051_s8 = inlined_call_operand.vmem [shape: f32[1,512], index: 8, kind: input, shape index: {}]   ;;  %s3052_s9 = inlined_call_operand.hbm [shape: f32[16,512], index: 9, kind: output, shape index: {}]  }
   0x1   :  { %v1972_v0 = vld [vmem:[%s3044_s1] sm:$0xff]   ;;  %1960 = vmatprep.subr.bf16.mxu0 %v2307_v1  ;;  %v35_v3 = vld [vmem:[%s3043_s0 + $0x8] sm:$0xff]  ;;  %1962 = vmatprep.mubr.msk.bf16.mxu0 %vm2308_vm0, %v2307_v1  ;;  %v1973_v5 = vld [vmem:[%s3046_s3 + $0x74] ss:$8 sps:$4 sm:$0xff]  }
   0x2   :  { %v34_v2 = vld [vmem:[%s3043_s0] sm:$0xff]  ;;  %1961 = vmatpush3.bf16.msra.mxu0 %v1972_v0  ;;  %v1975_v6 = vld [vmem:[%s3046_s3 + $0x70] ss:$8 sps:$4 sm:$0xff]   ;;  %208 = vmatprep.subr.bf16.mxu1 %v1973_v5  ;;  %v1979_v9 = vld [vmem:[%s3046_s3 + $0x54] ss:$8 sps:$4 sm:$0xff]  }
   0x3   :  { %v36_v4 = vpack.c.bf16 %v35_v3, %v34_v2  ;;  %v1976_v7 = vld [vmem:[%s3046_s3 + $0x64] ss:$8 sps:$4 sm:$0xff]   ;;  %209 = vmatpush1.bf16.msra.mxu1 %v1975_v6  ;;  %v1978_v8 = vld [vmem:[%s3046_s3 + $0x60] ss:$8 sps:$4 sm:$0xff]   ;;  %v1981_v10 = vld [vmem:[%s3046_s3 + $0x50] ss:$8 sps:$4 sm:$0xff]  }
   0x4   :  { %210 = vmatprep.subr.bf16.mxu1 %v1976_v7  ;;  %v1982_v11 = vld [vmem:[%s3046_s3 + $0x44] ss:$8 sps:$4 sm:$0xff]   ;;  %v1984_v12 = vld [vmem:[%s3046_s3 + $0x40] ss:$8 sps:$4 sm:$0xff]   ;;  %v1985_v13 = vld [vmem:[%s3046_s3 + $0x34] ss:$8 sps:$4 sm:$0xff]  }
   0x5   :  { %1963 = vmatmul.mubr.msk.bf16.vlgmr.msra.gmra.mxu0 %vm52_vm1, %v36_v4  ;;  %v1987_v14 = vld [vmem:[%s3046_s3 + $0x30] ss:$8 sps:$4 sm:$0xff]   ;;  %v1988_v15 = vld [vmem:[%s3046_s3 + $0x24] ss:$8 sps:$4 sm:$0xff]   ;;  %v1990_v16 = vld [vmem:[%s3046_s3 + $0x20] ss:$8 sps:$4 sm:$0xff]  }
   0x6   :  { %v1991_v17 = vld [vmem:[%s3046_s3 + $0x14] ss:$8 sps:$4 sm:$0xff]   ;;  %v1993_v18 = vld [vmem:[%s3046_s3 + $0x10] ss:$8 sps:$4 sm:$0xff]   ;;  %v1994_v19 = vld [vmem:[%s3046_s3 + $0x4] ss:$8 sps:$4 sm:$0xff]  }
   0x7   :  { %211 = vmatpush1.bf16.msra.mxu1 %v1978_v8  ;;  %v1996_v20 = vld [vmem:[%s3046_s3] ss:$8 sps:$4 sm:$0xff]  }
   0x8   :  { %212 = vmatprep.subr.bf16.mxu1 %v1979_v9 }
   0xb   :  { %213 = vmatpush1.bf16.msra.mxu1 %v1981_v10 }
   0xc   :  { %214 = vmatprep.subr.bf16.mxu1 %v1982_v11 }
   0xf   :  { %215 = vmatpush1.bf16.msra.mxu1 %v1984_v12 }
  0x10   :  { %216 = vmatprep.subr.bf16.mxu1 %v1985_v13 }
  0x13   :  { %217 = vmatpush1.bf16.msra.mxu1 %v1987_v14 }
  0x14   :  { %218 = vmatprep.subr.bf16.mxu1 %v1988_v15 }
  0x17   :  { %219 = vmatpush1.bf16.msra.mxu1 %v1990_v16 }
  0x18   :  { %220 = vmatprep.subr.bf16.mxu1 %v1991_v17 }
  0x1b   :  { %221 = vmatpush1.bf16.msra.mxu1 %v1993_v18 }
  0x1c   :  { %222 = vmatprep.subr.bf16.mxu1 %v1994_v19 }
  0x1d   :  { %14 = vsyncpa [#allocation3], 0  ;;  %v2309_v21 = vmov 0   ;;  %v1997_v22 = vld [vmem:[%s3048_s5 + $0xe0] ss:$16 sps:$4 sm:$0xff]  }
  0x1e   :  { %240 = vmatprep.mubr.bf16.mxu1 %v2309_v21  ;;  %v1999_v23 = vld [vmem:[%s3048_s5 + $0xe4] ss:$16 sps:$4 sm:$0xff]   ;;  %v2002_v24 = vld [vmem:[%s3048_s5 + $0xec] ss:$16 sps:$4 sm:$0xff]   ;;  %v2003_v26 = vld [vmem:[%s3048_s5 + $0xc0] ss:$16 sps:$4 sm:$0xff]  }
  0x1f   :  { %223 = vmatpush1.bf16.msra.mxu1 %v1996_v20  ;;  %v2005_v25 = vld [vmem:[%s3048_s5 + $0xc4] ss:$16 sps:$4 sm:$0xff]   ;;  %663 = vmatprep.subr.bf16.mxu0 %v1999_v23  ;;  %v2009_v28 = vld [vmem:[%s3048_s5 + $0xa0] ss:$16 sps:$4 sm:$0xff]   ;;  %v2000_v58 = vld [vmem:[%s3048_s5 + $0xe8] ss:$16 sps:$4 sm:$0xff]  }
  0x20   :  { %706 = vmatprep.subr.bf16.mxu1 %v2002_v24  ;;  %664 = vmatpush1.bf16.msra.mxu0 %v1997_v22  ;;  %v2011_v27 = vld [vmem:[%s3048_s5 + $0xa4] ss:$16 sps:$4 sm:$0xff]   ;;  %v2015_v30 = vld [vmem:[%s3048_s5 + $0x80] ss:$16 sps:$4 sm:$0xff]   ;;  %v2008_v60 = vld [vmem:[%s3048_s5 + $0xcc] ss:$16 sps:$4 sm:$0xff]  }
  0x21   :  { %665 = vmatprep.subr.bf16.mxu0 %v2005_v25  ;;  %v2017_v29 = vld [vmem:[%s3048_s5 + $0x84] ss:$16 sps:$4 sm:$0xff]   ;;  %v2021_v32 = vld [vmem:[%s3048_s5 + $0x60] ss:$16 sps:$4 sm:$0xff]   ;;  %v2006_v61 = vld [vmem:[%s3048_s5 + $0xc8] ss:$16 sps:$4 sm:$0xff]  }
  0x22   :  { %v2023_v31 = vld [vmem:[%s3048_s5 + $0x64] ss:$16 sps:$4 sm:$0xff]   ;;  %v2027_v34 = vld [vmem:[%s3048_s5 + $0x40] ss:$16 sps:$4 sm:$0xff]   ;;  %v2014_v62 = vld [vmem:[%s3048_s5 + $0xac] ss:$16 sps:$4 sm:$0xff]  }
  0x23   :  { %v2029_v33 = vld [vmem:[%s3048_s5 + $0x44] ss:$16 sps:$4 sm:$0xff]   ;;  %v2033_v36 = vld [vmem:[%s3048_s5 + $0x20] ss:$16 sps:$4 sm:$0xff]   ;;  %v2012_v63 = vld [vmem:[%s3048_s5 + $0xa8] ss:$16 sps:$4 sm:$0xff]  }
  0x24   :  { %666 = vmatpush1.bf16.msra.mxu0 %v2003_v26  ;;  %v2035_v35 = vld [vmem:[%s3048_s5 + $0x24] ss:$16 sps:$4 sm:$0xff]   ;;  %v2039_v38 = vld [vmem:[%s3048_s5] ss:$16 sps:$4 sm:$0xff]   ;;  %v2020_v0 = vld [vmem:[%s3048_s5 + $0x8c] ss:$16 sps:$4 sm:$0xff]  }
  0x25   :  { %667 = vmatprep.subr.bf16.mxu0 %v2011_v27  ;;  %v2041_v37 = vld [vmem:[%s3048_s5 + $0x4] ss:$16 sps:$4 sm:$0xff]   ;;  %v2045_v40 = vld [vmem:[%s3048_s5 + $0x1e0] ss:$16 sps:$4 sm:$0xff]   ;;  %v2018_v1 = vld [vmem:[%s3048_s5 + $0x88] ss:$16 sps:$4 sm:$0xff]  }
  0x26   :  { %v2047_v39 = vld [vmem:[%s3048_s5 + $0x1e4] ss:$16 sps:$4 sm:$0xff]   ;;  %v2051_v42 = vld [vmem:[%s3048_s5 + $0x1c0] ss:$16 sps:$4 sm:$0xff]   ;;  %v2026_v2 = vld [vmem:[%s3048_s5 + $0x6c] ss:$16 sps:$4 sm:$0xff]  }
  0x27   :  { %v2053_v41 = vld [vmem:[%s3048_s5 + $0x1c4] ss:$16 sps:$4 sm:$0xff]   ;;  %v2057_v44 = vld [vmem:[%s3048_s5 + $0x1a0] ss:$16 sps:$4 sm:$0xff]   ;;  %v2024_v3 = vld [vmem:[%s3048_s5 + $0x68] ss:$16 sps:$4 sm:$0xff]  }
  0x28   :  { %668 = vmatpush1.bf16.msra.mxu0 %v2009_v28  ;;  %v2059_v43 = vld [vmem:[%s3048_s5 + $0x1a4] ss:$16 sps:$4 sm:$0xff]   ;;  %v2063_v46 = vld [vmem:[%s3048_s5 + $0x180] ss:$16 sps:$4 sm:$0xff]   ;;  %v2032_v4 = vld [vmem:[%s3048_s5 + $0x4c] ss:$16 sps:$4 sm:$0xff]  }
  0x29   :  { %669 = vmatprep.subr.bf16.mxu0 %v2017_v29  ;;  %v2065_v45 = vld [vmem:[%s3048_s5 + $0x184] ss:$16 sps:$4 sm:$0xff]   ;;  %v2069_v48 = vld [vmem:[%s3048_s5 + $0x160] ss:$16 sps:$4 sm:$0xff]   ;;  %v2030_v5 = vld [vmem:[%s3048_s5 + $0x48] ss:$16 sps:$4 sm:$0xff]  }
  0x2a   :  { %v2071_v47 = vld [vmem:[%s3048_s5 + $0x164] ss:$16 sps:$4 sm:$0xff]   ;;  %v1747_v49 = vld [vmem:[%s3045_s2] ss:$0 sm:$0xff]  ;;  %v2038_v6 = vld [vmem:[%s3048_s5 + $0x2c] ss:$16 sps:$4 sm:$0xff]  }
  0x2b   :  { %v2036_v7 = vld [vmem:[%s3048_s5 + $0x28] ss:$16 sps:$4 sm:$0xff]   ;;  %v2044_v8 = vld [vmem:[%s3048_s5 + $0xc] ss:$16 sps:$4 sm:$0xff]   ;;  %v2077_v20 = vld [vmem:[%s3048_s5 + $0x144] ss:$16 sps:$4 sm:$0xff]  }
  0x2c   :  { %670 = vmatpush1.bf16.msra.mxu0 %v2015_v30  ;;  %v2042_v9 = vld [vmem:[%s3048_s5 + $0x8] ss:$16 sps:$4 sm:$0xff]   ;;  %v2050_v10 = vld [vmem:[%s3048_s5 + $0x1ec] ss:$16 sps:$4 sm:$0xff]   ;;  %v2075_v22 = vld [vmem:[%s3048_s5 + $0x140] ss:$16 sps:$4 sm:$0xff]  }
  0x2d   :  { %671 = vmatprep.subr.bf16.mxu0 %v2023_v31  ;;  %v2048_v11 = vld [vmem:[%s3048_s5 + $0x1e8] ss:$16 sps:$4 sm:$0xff]   ;;  %v2056_v12 = vld [vmem:[%s3048_s5 + $0x1cc] ss:$16 sps:$4 sm:$0xff]   ;;  %v2083_v24 = vld [vmem:[%s3048_s5 + $0x124] ss:$16 sps:$4 sm:$0xff]  }
  0x2e   :  { %v2054_v13 = vld [vmem:[%s3048_s5 + $0x1c8] ss:$16 sps:$4 sm:$0xff]   ;;  %v2062_v14 = vld [vmem:[%s3048_s5 + $0x1ac] ss:$16 sps:$4 sm:$0xff]   ;;  %v2081_v26 = vld [vmem:[%s3048_s5 + $0x120] ss:$16 sps:$4 sm:$0xff]  }
  0x2f   :  { %v2060_v15 = vld [vmem:[%s3048_s5 + $0x1a8] ss:$16 sps:$4 sm:$0xff]   ;;  %v2068_v16 = vld [vmem:[%s3048_s5 + $0x18c] ss:$16 sps:$4 sm:$0xff]   ;;  %v2089_v28 = vld [vmem:[%s3048_s5 + $0x104] ss:$16 sps:$4 sm:$0xff]  }
  0x30   :  { %672 = vmatpush1.bf16.msra.mxu0 %v2021_v32  ;;  %v2066_v17 = vld [vmem:[%s3048_s5 + $0x188] ss:$16 sps:$4 sm:$0xff]   ;;  %v2074_v18 = vld [vmem:[%s3048_s5 + $0x16c] ss:$16 sps:$4 sm:$0xff]   ;;  %v2087_v30 = vld [vmem:[%s3048_s5 + $0x100] ss:$16 sps:$4 sm:$0xff]  }
  0x31   :  { %673 = vmatprep.subr.bf16.mxu0 %v2029_v33  ;;  %v2072_v19 = vld [vmem:[%s3048_s5 + $0x168] ss:$16 sps:$4 sm:$0xff]   ;;  %v2080_v21 = vld [vmem:[%s3048_s5 + $0x14c] ss:$16 sps:$4 sm:$0xff]   ;;  %v2095_v32 = vld [vmem:[%s3050_s7 + $0xe4] ss:$16 sps:$4 sm:$0xff]  }
  0x32   :  { %v2078_v23 = vld [vmem:[%s3048_s5 + $0x148] ss:$16 sps:$4 sm:$0xff]   ;;  %v2086_v25 = vld [vmem:[%s3048_s5 + $0x12c] ss:$16 sps:$4 sm:$0xff]   ;;  %v2098_v33 = vld [vmem:[%s3050_s7 + $0x2e4] ss:$16 sps:$4 sm:$0xff]  }
  0x33   :  { %v2084_v27 = vld [vmem:[%s3048_s5 + $0x128] ss:$16 sps:$4 sm:$0xff]   ;;  %v2092_v29 = vld [vmem:[%s3048_s5 + $0x10c] ss:$16 sps:$4 sm:$0xff]  }
  0x34   :  { %674 = vmatpush1.bf16.msra.mxu0 %v2027_v34  ;;  %v2090_v31 = vld [vmem:[%s3048_s5 + $0x108] ss:$16 sps:$4 sm:$0xff]   ;;  %v118_v34 = vlaneseq }
  0x35   :  { %675 = vmatprep.subr.bf16.mxu0 %v2035_v35 }
  0x36   :  { %v2621_v35 = vshrl.u32 %v118_v34, 7  ;;  %v2164_v34 = vld [vmem:[%s3050_s7 + $0x384] ss:$16 sps:$4 sm:$0xff]  }
  0x38   :  { %676 = vmatpush1.bf16.msra.mxu0 %v2033_v36  ;;  %v2624_v36 = vsub.s32 1, %v2621_v35 }
  0x39   :  { %677 = vmatprep.subr.bf16.mxu0 %v2041_v37  ;;  %v2627_v37 = vsub.s32 0, %v2621_v35 }
  0x3c   :  { %678 = vmatpush1.bf16.msra.mxu0 %v2039_v38  ;;  %v116_v38 = vld [vmem:[%s3047_s4] sm:$0x3] }
  0x3d   :  { %679 = vmatprep.subr.bf16.mxu0 %v2047_v39 }
  0x40   :  { %680 = vmatpush2.bf16.msra.mxu0 %v2045_v40  ;;  %v125_v40 = vrot.slane %v116_v38, %v2624_v36 }
  0x41   :  { %681 = vmatprep.subr.bf16.mxu0 %v2053_v41  ;;  %v121_v41 = vrot.slane %v116_v38, %v2627_v37  ;;  %v2159_v38 = vld [vmem:[%s3050_s7 + $0x180] ss:$16 sps:$4 sm:$0xff]  }
  0x44   :  { %682 = vmatpush2.bf16.msra.mxu0 %v2051_v42 }
  0x45   :  { %683 = vmatprep.subr.bf16.mxu0 %v2059_v43 }
  0x48   :  { %684 = vmatpush2.bf16.msra.mxu0 %v2057_v44 }
  0x49   :  { %685 = vmatprep.subr.bf16.mxu0 %v2065_v45 }
  0x4c   :  { %686 = vmatpush2.bf16.msra.mxu0 %v2063_v46 }
  0x4d   :  { %687 = vmatprep.subr.bf16.mxu0 %v2071_v47 }
  0x50   :  { %688 = vmatpush2.bf16.msra.mxu0 %v2069_v48 }
  0x51   :  { %689 = vmatprep.subr.bf16.mxu0 %v2077_v20  ;;  %v2138_v20 = vld [vmem:[%s3050_s7 + $0x200] ss:$16 sps:$4 sm:$0xff]  }
  0x54   :  { %690 = vmatpush2.bf16.msra.mxu0 %v2075_v22  ;;  %v2146_v22 = vld [vmem:[%s3050_s7 + $0x3e4] ss:$16 sps:$4 sm:$0xff]  }
  0x55   :  { %691 = vmatprep.subr.bf16.mxu0 %v2083_v24  ;;  %v2144_v24 = vld [vmem:[%s3050_s7 + $0x3e0] ss:$16 sps:$4 sm:$0xff]  }
  0x58   :  { %692 = vmatpush2.bf16.msra.mxu0 %v2081_v26  ;;  %v2152_v26 = vld [vmem:[%s3050_s7 + $0x3c4] ss:$16 sps:$4 sm:$0xff]  }
  0x59   :  { %693 = vmatprep.subr.bf16.mxu0 %v2089_v28  ;;  %v2150_v28 = vld [vmem:[%s3050_s7 + $0x3c0] ss:$16 sps:$4 sm:$0xff]  }
  0x5c   :  { %694 = vmatpush2.bf16.msra.mxu0 %v2087_v30  ;;  %v2158_v30 = vld [vmem:[%s3050_s7 + $0x3a4] ss:$16 sps:$4 sm:$0xff]  }
  0x5d   :  { %1551 = vmatprep.subr.bf16.mxu0 %v2095_v32  ;;  %v2156_v32 = vld [vmem:[%s3050_s7 + $0x3a0] ss:$16 sps:$4 sm:$0xff]  }
  0xc5   :  { %v90_v50 = vpop.f32.mrf.mxu0 }
  0xc6   :  { %v91_v52 = vadd.f32 %v1747_v49, %v90_v50 }
  0xc7   :  { %v1964_v51 = vpop.f32.mrf.mxu0 }
  0xc8   :  { %v97_v56 = vmax.f32 %v91_v52, 0.0 }
  0xc9   :  { %v93_v53 = vpop.f32.mrf.mxu0 }
  0xca   :  { %v94_v54 = vadd.f32 %v1747_v49, %v93_v53 }
  0xcb   :  { %v1965_v55 = vpop.f32.mrf.mxu0 }
  0xcc   :  { %v98_v57 = vmax.f32 %v94_v54, 0.0  ;;  %v2093_v54 = vld [vmem:[%s3050_s7 + $0xe0] ss:$16 sps:$4 sm:$0xff]  }
  0xcd   :  { %v2096_v55 = vld [vmem:[%s3050_s7 + $0x2e0] ss:$16 sps:$4 sm:$0xff]  }
  0xce   :  { %v99_v59 = vpack.c.bf16 %v98_v57, %v97_v56  ;;  %v2101_v57 = vld [vmem:[%s3050_s7 + $0xc4] ss:$16 sps:$4 sm:$0xff]  }
  0xd0   :  { %241 = vmatmul.mubr.bf16.vlgmr.msra.gmra.mxu1 %v99_v59  ;;  %v2099_v59 = vld [vmem:[%s3050_s7 + $0xc0] ss:$16 sps:$4 sm:$0xff]  }
  0xd1   :  { %707 = vmatpush1.bf16.msra.mxu1 %v2000_v58  ;;  %v2104_v58 = vld [vmem:[%s3050_s7 + $0x2c4] ss:$16 sps:$4 sm:$0xff]  }
  0xd2   :  { %708 = vmatprep.subr.bf16.mxu1 %v2008_v60  ;;  %v2102_v60 = vld [vmem:[%s3050_s7 + $0x2c0] ss:$16 sps:$4 sm:$0xff]  }
  0xd5   :  { %709 = vmatpush1.bf16.msra.mxu1 %v2006_v61  ;;  %v2107_v61 = vld [vmem:[%s3050_s7 + $0xa4] ss:$16 sps:$4 sm:$0xff]  }
  0xd6   :  { %710 = vmatprep.subr.bf16.mxu1 %v2014_v62  ;;  %v2110_v62 = vld [vmem:[%s3050_s7 + $0x2a4] ss:$16 sps:$4 sm:$0xff]  }
  0xd9   :  { %711 = vmatpush1.bf16.msra.mxu1 %v2012_v63  ;;  %v2105_v63 = vld [vmem:[%s3050_s7 + $0xa0] ss:$16 sps:$4 sm:$0xff]  }
  0xda   :  { %712 = vmatprep.subr.bf16.mxu1 %v2020_v0  ;;  %v2108_v0 = vld [vmem:[%s3050_s7 + $0x2a0] ss:$16 sps:$4 sm:$0xff]  }
  0xdd   :  { %713 = vmatpush1.bf16.msra.mxu1 %v2018_v1  ;;  %v2113_v1 = vld [vmem:[%s3050_s7 + $0x84] ss:$16 sps:$4 sm:$0xff]  }
  0xde   :  { %714 = vmatprep.subr.bf16.mxu1 %v2026_v2  ;;  %v2116_v2 = vld [vmem:[%s3050_s7 + $0x284] ss:$16 sps:$4 sm:$0xff]  }
  0xe1   :  { %715 = vmatpush1.bf16.msra.mxu1 %v2024_v3  ;;  %v2111_v3 = vld [vmem:[%s3050_s7 + $0x80] ss:$16 sps:$4 sm:$0xff]  }
  0xe2   :  { %716 = vmatprep.subr.bf16.mxu1 %v2032_v4  ;;  %v2114_v4 = vld [vmem:[%s3050_s7 + $0x280] ss:$16 sps:$4 sm:$0xff]  }
  0xe5   :  { %717 = vmatpush1.bf16.msra.mxu1 %v2030_v5  ;;  %v2119_v5 = vld [vmem:[%s3050_s7 + $0x64] ss:$16 sps:$4 sm:$0xff]  }
  0xe6   :  { %718 = vmatprep.subr.bf16.mxu1 %v2038_v6  ;;  %v2122_v6 = vld [vmem:[%s3050_s7 + $0x264] ss:$16 sps:$4 sm:$0xff]  }
  0xe9   :  { %719 = vmatpush1.bf16.msra.mxu1 %v2036_v7  ;;  %v2117_v7 = vld [vmem:[%s3050_s7 + $0x60] ss:$16 sps:$4 sm:$0xff]  }
  0xea   :  { %720 = vmatprep.subr.bf16.mxu1 %v2044_v8  ;;  %v2120_v8 = vld [vmem:[%s3050_s7 + $0x260] ss:$16 sps:$4 sm:$0xff]  }
  0xed   :  { %721 = vmatpush1.bf16.msra.mxu1 %v2042_v9  ;;  %v2125_v9 = vld [vmem:[%s3050_s7 + $0x44] ss:$16 sps:$4 sm:$0xff]  }
  0xee   :  { %722 = vmatprep.subr.bf16.mxu1 %v2050_v10  ;;  %v2128_v10 = vld [vmem:[%s3050_s7 + $0x244] ss:$16 sps:$4 sm:$0xff]  }
  0xf1   :  { %723 = vmatpush2.bf16.msra.mxu1 %v2048_v11  ;;  %v2123_v11 = vld [vmem:[%s3050_s7 + $0x40] ss:$16 sps:$4 sm:$0xff]  }
  0xf2   :  { %724 = vmatprep.subr.bf16.mxu1 %v2056_v12  ;;  %v2126_v12 = vld [vmem:[%s3050_s7 + $0x240] ss:$16 sps:$4 sm:$0xff]  }
  0xf5   :  { %725 = vmatpush2.bf16.msra.mxu1 %v2054_v13  ;;  %v2131_v13 = vld [vmem:[%s3050_s7 + $0x24] ss:$16 sps:$4 sm:$0xff]  }
  0xf6   :  { %726 = vmatprep.subr.bf16.mxu1 %v2062_v14  ;;  %v2134_v14 = vld [vmem:[%s3050_s7 + $0x224] ss:$16 sps:$4 sm:$0xff]  }
  0xf9   :  { %727 = vmatpush2.bf16.msra.mxu1 %v2060_v15  ;;  %v2129_v15 = vld [vmem:[%s3050_s7 + $0x20] ss:$16 sps:$4 sm:$0xff]  }
  0xfa   :  { %728 = vmatprep.subr.bf16.mxu1 %v2068_v16  ;;  %v2132_v16 = vld [vmem:[%s3050_s7 + $0x220] ss:$16 sps:$4 sm:$0xff]  }
  0xfd   :  { %729 = vmatpush2.bf16.msra.mxu1 %v2066_v17  ;;  %v2137_v17 = vld [vmem:[%s3050_s7 + $0x4] ss:$16 sps:$4 sm:$0xff]  }
  0xfe   :  { %730 = vmatprep.subr.bf16.mxu1 %v2074_v18  ;;  %v2140_v18 = vld [vmem:[%s3050_s7 + $0x204] ss:$16 sps:$4 sm:$0xff]  }
 0x101   :  { %731 = vmatpush2.bf16.msra.mxu1 %v2072_v19  ;;  %v2135_v19 = vld [vmem:[%s3050_s7] ss:$16 sps:$4 sm:$0xff]  }
 0x102   :  { %732 = vmatprep.subr.bf16.mxu1 %v2080_v21  ;;  %v2143_v21 = vld [vmem:[%s3050_s7 + $0x1e4] ss:$16 sps:$4 sm:$0xff]  }
 0x105   :  { %733 = vmatpush2.bf16.msra.mxu1 %v2078_v23  ;;  %v2141_v23 = vld [vmem:[%s3050_s7 + $0x1e0] ss:$16 sps:$4 sm:$0xff]  }
 0x106   :  { %734 = vmatprep.subr.bf16.mxu1 %v2086_v25  ;;  %v2149_v25 = vld [vmem:[%s3050_s7 + $0x1c4] ss:$16 sps:$4 sm:$0xff]  }
 0x109   :  { %735 = vmatpush2.bf16.msra.mxu1 %v2084_v27  ;;  %v2147_v27 = vld [vmem:[%s3050_s7 + $0x1c0] ss:$16 sps:$4 sm:$0xff]  }
 0x10a   :  { %736 = vmatprep.subr.bf16.mxu1 %v2092_v29  ;;  %v2155_v29 = vld [vmem:[%s3050_s7 + $0x1a4] ss:$16 sps:$4 sm:$0xff]  }
 0x10d   :  { %737 = vmatpush2.bf16.msra.mxu1 %v2090_v31  ;;  %v2153_v31 = vld [vmem:[%s3050_s7 + $0x1a0] ss:$16 sps:$4 sm:$0xff]  }
 0x10e   :  { %1594 = vmatprep.subr.bf16.mxu1 %v2098_v33  ;;  %v2161_v33 = vld [vmem:[%s3050_s7 + $0x184] ss:$16 sps:$4 sm:$0xff]  }
 0x190   :  { %v242_v39 = vpop.f32.mrf.mxu1 }
 0x191   :  { %v243_v46 = vadd.f32 %v242_v39, %v121_v41  ;;  %v2162_v39 = vld [vmem:[%s3050_s7 + $0x380] ss:$16 sps:$4 sm:$0xff]  }
 0x192   :  { %v244_v42 = vpop.f32.mrf.mxu1 }
 0x193   :  { %v245_v44 = vadd.f32 %v244_v42, %v125_v40  ;;  %v251_v52 = vmax.f32 %v243_v46, 0.0  ;;  %v2165_v42 = vld [vmem:[%s3050_s7 + $0x160] ss:$16 sps:$4 sm:$0xff]  }
 0x194   :  { %v246_v43 = vpop.f32.mrf.mxu1  ;;  %v2171_v46 = vld [vmem:[%s3050_s7 + $0x140] ss:$16 sps:$4 sm:$0xff]  }
 0x195   :  { %v247_v45 = vadd.f32 %v246_v43, %v121_v41  ;;  %v252_v50 = vmax.f32 %v245_v44, 0.0  ;;  %v2170_v41 = vld [vmem:[%s3050_s7 + $0x364] ss:$16 sps:$4 sm:$0xff]   ;;  %v2168_v43 = vld [vmem:[%s3050_s7 + $0x360] ss:$16 sps:$4 sm:$0xff]  }
 0x196   :  { %v248_v47 = vpop.f32.mrf.mxu1  ;;  %v2173_v44 = vld [vmem:[%s3050_s7 + $0x144] ss:$16 sps:$4 sm:$0xff]  }
 0x197   :  { %v249_v48 = vadd.f32 %v248_v47, %v125_v40  ;;  %v253_v49 = vmax.f32 %v247_v45, 0.0  ;;  %v2167_v40 = vld [vmem:[%s3050_s7 + $0x164] ss:$16 sps:$4 sm:$0xff]   ;;  %v2174_v47 = vld [vmem:[%s3050_s7 + $0x340] ss:$16 sps:$4 sm:$0xff]  }
 0x198   :  { %v2176_v45 = vld [vmem:[%s3050_s7 + $0x344] ss:$16 sps:$4 sm:$0xff]  }
 0x199   :  { %v254_v51 = vmax.f32 %v249_v48, 0.0  ;;  %v255_v56 = vpack.c.bf16 %v253_v49, %v251_v52  ;;  %v2179_v48 = vld [vmem:[%s3050_s7 + $0x124] ss:$16 sps:$4 sm:$0xff]  }
 0x19a   :  { %v2182_v49 = vld [vmem:[%s3050_s7 + $0x324] ss:$16 sps:$4 sm:$0xff]  }
 0x19b   :  { %v256_v53 = vpack.c.bf16 %v254_v51, %v252_v50  ;;  %v2177_v50 = vld [vmem:[%s3050_s7 + $0x120] ss:$16 sps:$4 sm:$0xff]   ;;  %v2185_v52 = vld [vmem:[%s3050_s7 + $0x104] ss:$16 sps:$4 sm:$0xff]  }
 0x19c   :  { %v2180_v51 = vld [vmem:[%s3050_s7 + $0x320] ss:$16 sps:$4 sm:$0xff]  }
 0x19d   :  { %695 = vmatprep.mubr.bf16.mxu0 %v256_v53  ;;  %738 = vmatprep.mubr.bf16.mxu1 %v256_v53  ;;  %v2188_v53 = vld [vmem:[%s3050_s7 + $0x304] ss:$16 sps:$4 sm:$0xff]  }
 0x19e   :  { %696 = vmatmul.mubr.bf16.vlgmr.msra.gmra.mxu0 %v255_v56  ;;  %739 = vmatmul.mubr.bf16.vlgmr.msra.gmra.mxu1 %v255_v56  ;;  %v2191_v56 = vld [vmem:[%s3050_s7 + $0xec] ss:$16 sps:$4 sm:$0xff]  }
 0x19f   :  { %1552 = vmatpush1.bf16.msra.mxu0 %v2093_v54  ;;  %1595 = vmatpush1.bf16.msra.mxu1 %v2096_v55  ;;  %v2183_v54 = vld [vmem:[%s3050_s7 + $0x100] ss:$16 sps:$4 sm:$0xff]  }
 0x1a0   :  { %1553 = vmatprep.subr.bf16.mxu0 %v2101_v57  ;;  %1596 = vmatprep.subr.bf16.mxu1 %v2104_v58  ;;  %v2186_v55 = vld [vmem:[%s3050_s7 + $0x300] ss:$16 sps:$4 sm:$0xff]   ;;  %v2194_v57 = vld [vmem:[%s3050_s7 + $0x2ec] ss:$16 sps:$4 sm:$0xff]   ;;  %v337_v58 = vsub.s32 3, %v2621_v35 }
 0x1a3   :  { %1554 = vmatpush1.bf16.msra.mxu0 %v2099_v59  ;;  %1597 = vmatpush1.bf16.msra.mxu1 %v2102_v60  ;;  %v333_v59 = vsub.s32 2, %v2621_v35  ;;  %v321_v60 = vld [vmem:[%s3049_s6] sm:$0xf] }
 0x1a4   :  { %1555 = vmatprep.subr.bf16.mxu0 %v2107_v61  ;;  %1598 = vmatprep.subr.bf16.mxu1 %v2110_v62 }
 0x1a7   :  { %1556 = vmatpush1.bf16.msra.mxu0 %v2105_v63  ;;  %1599 = vmatpush1.bf16.msra.mxu1 %v2108_v0  ;;  %v330_v63 = vrot.slane %v321_v60, %v2624_v36  ;;  %v338_v0 = vrot.slane %v321_v60, %v337_v58 }
 0x1a8   :  { %1557 = vmatprep.subr.bf16.mxu0 %v2113_v1  ;;  %1600 = vmatprep.subr.bf16.mxu1 %v2116_v2  ;;  %v326_v1 = vrot.slane %v321_v60, %v2627_v37  ;;  %v334_v2 = vrot.slane %v321_v60, %v333_v59  ;;  %v2233_v60 = vld [vmem:[%s3050_s7 + $0xc] ss:$16 sps:$4 sm:$0xff]  }
 0x1ab   :  { %1558 = vmatpush1.bf16.msra.mxu0 %v2111_v3  ;;  %1601 = vmatpush1.bf16.msra.mxu1 %v2114_v4 }
 0x1ac   :  { %1559 = vmatprep.subr.bf16.mxu0 %v2119_v5  ;;  %1602 = vmatprep.subr.bf16.mxu1 %v2122_v6 }
 0x1af   :  { %1560 = vmatpush1.bf16.msra.mxu0 %v2117_v7  ;;  %1603 = vmatpush1.bf16.msra.mxu1 %v2120_v8 }
 0x1b0   :  { %1561 = vmatprep.subr.bf16.mxu0 %v2125_v9  ;;  %1604 = vmatprep.subr.bf16.mxu1 %v2128_v10 }
 0x1b3   :  { %1562 = vmatpush1.bf16.msra.mxu0 %v2123_v11  ;;  %1605 = vmatpush1.bf16.msra.mxu1 %v2126_v12 }
 0x1b4   :  { %1563 = vmatprep.subr.bf16.mxu0 %v2131_v13  ;;  %1606 = vmatprep.subr.bf16.mxu1 %v2134_v14 }
 0x1b7   :  { %1564 = vmatpush1.bf16.msra.mxu0 %v2129_v15  ;;  %1607 = vmatpush1.bf16.msra.mxu1 %v2132_v16 }
 0x1b8   :  { %1565 = vmatprep.subr.bf16.mxu0 %v2137_v17  ;;  %1608 = vmatprep.subr.bf16.mxu1 %v2140_v18 }
 0x1bb   :  { %1566 = vmatpush1.bf16.msra.mxu0 %v2135_v19  ;;  %1609 = vmatpush1.bf16.msra.mxu1 %v2138_v20 }
 0x1bc   :  { %1567 = vmatprep.subr.bf16.mxu0 %v2143_v21  ;;  %1610 = vmatprep.subr.bf16.mxu1 %v2146_v22 }
 0x1bf   :  { %1568 = vmatpush2.bf16.msra.mxu0 %v2141_v23  ;;  %1611 = vmatpush2.bf16.msra.mxu1 %v2144_v24 }
 0x1c0   :  { %1569 = vmatprep.subr.bf16.mxu0 %v2149_v25  ;;  %1612 = vmatprep.subr.bf16.mxu1 %v2152_v26 }
 0x1c3   :  { %1570 = vmatpush2.bf16.msra.mxu0 %v2147_v27  ;;  %1613 = vmatpush2.bf16.msra.mxu1 %v2150_v28  ;;  %v2189_v27 = vld [vmem:[%s3050_s7 + $0xe8] ss:$16 sps:$4 sm:$0xff]  }
 0x1c4   :  { %1571 = vmatprep.subr.bf16.mxu0 %v2155_v29  ;;  %1614 = vmatprep.subr.bf16.mxu1 %v2158_v30  ;;  %v2192_v28 = vld [vmem:[%s3050_s7 + $0x2e8] ss:$16 sps:$4 sm:$0xff]  }
 0x1c7   :  { %1572 = vmatpush2.bf16.msra.mxu0 %v2153_v31  ;;  %1615 = vmatpush2.bf16.msra.mxu1 %v2156_v32  ;;  %v2197_v31 = vld [vmem:[%s3050_s7 + $0xcc] ss:$16 sps:$4 sm:$0xff]  }
 0x1c8   :  { %1573 = vmatprep.subr.bf16.mxu0 %v2161_v33  ;;  %1616 = vmatprep.subr.bf16.mxu1 %v2164_v34  ;;  %v2200_v32 = vld [vmem:[%s3050_s7 + $0x2cc] ss:$16 sps:$4 sm:$0xff]   ;;  %v2195_v33 = vld [vmem:[%s3050_s7 + $0xc8] ss:$16 sps:$4 sm:$0xff]  }
 0x1c9   :  { %v2198_v34 = vld [vmem:[%s3050_s7 + $0x2c8] ss:$16 sps:$4 sm:$0xff]  }
 0x1cb   :  { %1574 = vmatpush2.bf16.msra.mxu0 %v2159_v38  ;;  %1617 = vmatpush2.bf16.msra.mxu1 %v2162_v39  ;;  %v2203_v38 = vld [vmem:[%s3050_s7 + $0xac] ss:$16 sps:$4 sm:$0xff]  }
 0x1cc   :  { %1575 = vmatprep.subr.bf16.mxu0 %v2167_v40  ;;  %1618 = vmatprep.subr.bf16.mxu1 %v2170_v41  ;;  %v2206_v39 = vld [vmem:[%s3050_s7 + $0x2ac] ss:$16 sps:$4 sm:$0xff]   ;;  %v2201_v40 = vld [vmem:[%s3050_s7 + $0xa8] ss:$16 sps:$4 sm:$0xff]  }
 0x1cd   :  { %v2204_v41 = vld [vmem:[%s3050_s7 + $0x2a8] ss:$16 sps:$4 sm:$0xff]  }
 0x1cf   :  { %1576 = vmatpush2.bf16.msra.mxu0 %v2165_v42  ;;  %1619 = vmatpush2.bf16.msra.mxu1 %v2168_v43  ;;  %v2209_v42 = vld [vmem:[%s3050_s7 + $0x8c] ss:$16 sps:$4 sm:$0xff]  }
 0x1d0   :  { %1577 = vmatprep.subr.bf16.mxu0 %v2173_v44  ;;  %1620 = vmatprep.subr.bf16.mxu1 %v2176_v45  ;;  %v2212_v43 = vld [vmem:[%s3050_s7 + $0x28c] ss:$16 sps:$4 sm:$0xff]   ;;  %v2207_v44 = vld [vmem:[%s3050_s7 + $0x88] ss:$16 sps:$4 sm:$0xff]  }
 0x1d1   :  { %v2210_v45 = vld [vmem:[%s3050_s7 + $0x288] ss:$16 sps:$4 sm:$0xff]  }
 0x1d3   :  { %1578 = vmatpush2.bf16.msra.mxu0 %v2171_v46  ;;  %1621 = vmatpush2.bf16.msra.mxu1 %v2174_v47  ;;  %v2215_v46 = vld [vmem:[%s3050_s7 + $0x6c] ss:$16 sps:$4 sm:$0xff]  }
 0x1d4   :  { %1579 = vmatprep.subr.bf16.mxu0 %v2179_v48  ;;  %1622 = vmatprep.subr.bf16.mxu1 %v2182_v49  ;;  %v2218_v47 = vld [vmem:[%s3050_s7 + $0x26c] ss:$16 sps:$4 sm:$0xff]   ;;  %v2213_v48 = vld [vmem:[%s3050_s7 + $0x68] ss:$16 sps:$4 sm:$0xff]  }
 0x1d5   :  { %v2216_v49 = vld [vmem:[%s3050_s7 + $0x268] ss:$16 sps:$4 sm:$0xff]  }
 0x1d7   :  { %1580 = vmatpush2.bf16.msra.mxu0 %v2177_v50  ;;  %1623 = vmatpush2.bf16.msra.mxu1 %v2180_v51  ;;  %v2221_v50 = vld [vmem:[%s3050_s7 + $0x4c] ss:$16 sps:$4 sm:$0xff]  }
 0x1d8   :  { %1581 = vmatprep.subr.bf16.mxu0 %v2185_v52  ;;  %1624 = vmatprep.subr.bf16.mxu1 %v2188_v53  ;;  %v2224_v51 = vld [vmem:[%s3050_s7 + $0x24c] ss:$16 sps:$4 sm:$0xff]   ;;  %v2219_v52 = vld [vmem:[%s3050_s7 + $0x48] ss:$16 sps:$4 sm:$0xff]  }
 0x1d9   :  { %v2222_v53 = vld [vmem:[%s3050_s7 + $0x248] ss:$16 sps:$4 sm:$0xff]  }
 0x1db   :  { %1582 = vmatpush2.bf16.msra.mxu0 %v2183_v54  ;;  %1625 = vmatpush2.bf16.msra.mxu1 %v2186_v55  ;;  %v2227_v54 = vld [vmem:[%s3050_s7 + $0x2c] ss:$16 sps:$4 sm:$0xff]  }
 0x1dc   :  { %1637 = vmatprep.subr.bf16.mxu0 %v2191_v56  ;;  %1680 = vmatprep.subr.bf16.mxu1 %v2194_v57  ;;  %v2230_v55 = vld [vmem:[%s3050_s7 + $0x22c] ss:$16 sps:$4 sm:$0xff]   ;;  %v2225_v56 = vld [vmem:[%s3050_s7 + $0x28] ss:$16 sps:$4 sm:$0xff]  }
 0x1dd   :  { %v2228_v57 = vld [vmem:[%s3050_s7 + $0x228] ss:$16 sps:$4 sm:$0xff]  }
 0x25e   :  { %v697_v61 = vpop.f32.mrf.mxu0  ;;  %v740_v62 = vpop.f32.mrf.mxu1 }
 0x25f   :  { %v698_v11 = vadd.f32 %v697_v61, %v326_v1  ;;  %v741_v12 = vadd.f32 %v740_v62, %v334_v2  ;;  %v2236_v61 = vld [vmem:[%s3050_s7 + $0x20c] ss:$16 sps:$4 sm:$0xff]   ;;  %v2231_v62 = vld [vmem:[%s3050_s7 + $0x8] ss:$16 sps:$4 sm:$0xff]  }
 0x260   :  { %v699_v3 = vpop.f32.mrf.mxu0  ;;  %v742_v4 = vpop.f32.mrf.mxu1 }
 0x261   :  { %v700_v7 = vadd.f32 %v699_v3, %v330_v63  ;;  %v743_v8 = vadd.f32 %v742_v4, %v338_v0  ;;  %v749_v23 = vmax.f32 %v698_v11, 0.0  ;;  %v751_v24 = vmax.f32 %v741_v12, 0.0  ;;  %v2240_v3 = vld [vmem:[%s3050_s7 + $0x3e8] ss:$16 sps:$4 sm:$0xff]   ;;  %v2245_v4 = vld [vmem:[%s3050_s7 + $0x1cc] ss:$16 sps:$4 sm:$0xff]  }
 0x262   :  { %v701_v5 = vpop.f32.mrf.mxu0  ;;  %v744_v6 = vpop.f32.mrf.mxu1  ;;  %v2252_v11 = vld [vmem:[%s3050_s7 + $0x3a8] ss:$16 sps:$4 sm:$0xff]   ;;  %v2257_v12 = vld [vmem:[%s3050_s7 + $0x18c] ss:$16 sps:$4 sm:$0xff]  }
 0x263   :  { %v702_v9 = vadd.f32 %v701_v5, %v326_v1  ;;  %v745_v10 = vadd.f32 %v744_v6, %v334_v2  ;;  %v750_v19 = vmax.f32 %v700_v7, 0.0  ;;  %v752_v20 = vmax.f32 %v743_v8, 0.0  ;;  %v2242_v1 = vld [vmem:[%s3050_s7 + $0x3ec] ss:$16 sps:$4 sm:$0xff]   ;;  %v2237_v2 = vld [vmem:[%s3050_s7 + $0x1e8] ss:$16 sps:$4 sm:$0xff]  }
 0x264   :  { %v703_v13 = vpop.f32.mrf.mxu0  ;;  %v746_v14 = vpop.f32.mrf.mxu1  ;;  %v2248_v5 = vld [vmem:[%s3050_s7 + $0x3cc] ss:$16 sps:$4 sm:$0xff]   ;;  %v2243_v6 = vld [vmem:[%s3050_s7 + $0x1c8] ss:$16 sps:$4 sm:$0xff]  }
 0x265   :  { %v704_v15 = vadd.f32 %v703_v13, %v330_v63  ;;  %v747_v16 = vadd.f32 %v746_v14, %v338_v0  ;;  %v753_v17 = vmax.f32 %v702_v9, 0.0  ;;  %v755_v18 = vmax.f32 %v745_v10, 0.0  ;;  %v2234_v63 = vld [vmem:[%s3050_s7 + $0x208] ss:$16 sps:$4 sm:$0xff]   ;;  %v2239_v0 = vld [vmem:[%s3050_s7 + $0x1ec] ss:$16 sps:$4 sm:$0xff]  }
 0x266   :  { %v2246_v7 = vld [vmem:[%s3050_s7 + $0x3c8] ss:$16 sps:$4 sm:$0xff]   ;;  %v2251_v8 = vld [vmem:[%s3050_s7 + $0x1ac] ss:$16 sps:$4 sm:$0xff]  }
 0x267   :  { %v754_v21 = vmax.f32 %v704_v15, 0.0  ;;  %v756_v22 = vmax.f32 %v747_v16, 0.0  ;;  %v2843_v29 = vpack.c.bf16 %v753_v17, %v749_v23  ;;  %v2845_v30 = vpack.c.bf16 %v755_v18, %v751_v24  ;;  %v2254_v9 = vld [vmem:[%s3050_s7 + $0x3ac] ss:$16 sps:$4 sm:$0xff]   ;;  %v2249_v10 = vld [vmem:[%s3050_s7 + $0x1a8] ss:$16 sps:$4 sm:$0xff]  }
 0x268   :  { %v2260_v13 = vld [vmem:[%s3050_s7 + $0x38c] ss:$16 sps:$4 sm:$0xff]   ;;  %v2255_v14 = vld [vmem:[%s3050_s7 + $0x188] ss:$16 sps:$4 sm:$0xff]  }
 0x269   :  { %v758_v25 = vpack.c.bf16 %v754_v21, %v750_v19  ;;  %v760_v26 = vpack.c.bf16 %v756_v22, %v752_v20  ;;  %v2258_v15 = vld [vmem:[%s3050_s7 + $0x388] ss:$16 sps:$4 sm:$0xff]   ;;  %v2263_v16 = vld [vmem:[%s3050_s7 + $0x16c] ss:$16 sps:$4 sm:$0xff]  }
 0x26a   :  { %v2266_v17 = vld [vmem:[%s3050_s7 + $0x36c] ss:$16 sps:$4 sm:$0xff]   ;;  %v2261_v18 = vld [vmem:[%s3050_s7 + $0x168] ss:$16 sps:$4 sm:$0xff]  }
 0x26b   :  { %1583 = vmatprep.mubr.bf16.mxu0 %v758_v25  ;;  %1626 = vmatprep.mubr.bf16.mxu1 %v760_v26  ;;  %v2264_v19 = vld [vmem:[%s3050_s7 + $0x368] ss:$16 sps:$4 sm:$0xff]   ;;  %v2269_v20 = vld [vmem:[%s3050_s7 + $0x14c] ss:$16 sps:$4 sm:$0xff]  }
 0x26c   :  { %1584 = vmatmul.mubr.bf16.vlgmr.msra.gmra.mxu0 %v2843_v29  ;;  %1627 = vmatmul.mubr.bf16.vlgmr.msra.gmra.mxu1 %v2845_v30  ;;  %v2272_v21 = vld [vmem:[%s3050_s7 + $0x34c] ss:$16 sps:$4 sm:$0xff]   ;;  %v2267_v22 = vld [vmem:[%s3050_s7 + $0x148] ss:$16 sps:$4 sm:$0xff]  }
 0x26d   :  { %1638 = vmatpush1.bf16.msra.mxu0 %v2189_v27  ;;  %1681 = vmatpush1.bf16.msra.mxu1 %v2192_v28  ;;  %v2270_v23 = vld [vmem:[%s3050_s7 + $0x348] ss:$16 sps:$4 sm:$0xff]   ;;  %v2275_v24 = vld [vmem:[%s3050_s7 + $0x12c] ss:$16 sps:$4 sm:$0xff]  }
 0x26e   :  { %1669 = vmatprep.mubr.bf16.mxu0 %v758_v25  ;;  %1712 = vmatprep.mubr.bf16.mxu1 %v760_v26  ;;  %v2278_v25 = vld [vmem:[%s3050_s7 + $0x32c] ss:$16 sps:$4 sm:$0xff]   ;;  %v2273_v26 = vld [vmem:[%s3050_s7 + $0x128] ss:$16 sps:$4 sm:$0xff]  }
 0x26f   :  { %1639 = vmatprep.subr.bf16.mxu0 %v2197_v31  ;;  %1682 = vmatprep.subr.bf16.mxu1 %v2200_v32  ;;  %v2276_v27 = vld [vmem:[%s3050_s7 + $0x328] ss:$16 sps:$4 sm:$0xff]   ;;  %v2281_v28 = vld [vmem:[%s3050_s7 + $0x10c] ss:$16 sps:$4 sm:$0xff]  }
 0x270   :  { %v2284_v31 = vld [vmem:[%s3050_s7 + $0x30c] ss:$16 sps:$4 sm:$0xff]   ;;  %v2279_v32 = vld [vmem:[%s3050_s7 + $0x108] ss:$16 sps:$4 sm:$0xff]  }
 0x271   :  { %1640 = vmatpush1.bf16.msra.mxu0 %v2195_v33  ;;  %1683 = vmatpush1.bf16.msra.mxu1 %v2198_v34  ;;  %v2282_v33 = vld [vmem:[%s3050_s7 + $0x308] ss:$16 sps:$4 sm:$0xff]   ;;  %v889_v34 = vld [vmem:[%s3051_s8] sm:$0xf]  ;;  %s2310_s7 = smov [#allocation2]  }
 0x272   :  { %1641 = vmatprep.subr.bf16.mxu0 %v2203_v38  ;;  %1684 = vmatprep.subr.bf16.mxu1 %v2206_v39  ;;  %v894_v38 = vrot.slane %v889_v34, %v2627_v37  ;;  %v898_v39 = vrot.slane %v889_v34, %v2624_v36  ;;  %v902_v36 = vrot.slane %v889_v34, %v333_v59  ;;  %s1736_s8 = sshll.u32 %s2310_s7, 4  ;;  %s1737_s8 = int_to_ptr.vmem [resolvable:$true] %s1736_s8 }
 0x273   :  { %s2285_s17 = scalar_lea.vmem %s1737_s8, 1024  ;;  %p2290_p1 = scmp.lt.s32.totalorder %s1737_s8, %s1737_s8 }
 0x274   :  { %p2286_p0 = scmp.ne.s32.totalorder %s1737_s8, %s2285_s17  ;;  %p2291_p2 = scmp.lt.s32.totalorder %s2285_s17, %s2285_s17 }
 0x275   :  { %1642 = vmatpush1.bf16.msra.mxu0 %v2201_v40  ;;  %1685 = vmatpush1.bf16.msra.mxu1 %v2204_v41 }
 0x276   :  { %1643 = vmatprep.subr.bf16.mxu0 %v2209_v42  ;;  %1686 = vmatprep.subr.bf16.mxu1 %v2212_v43  ;;  %p2292_p3 = por %p2291_p2, %p2290_p1 }
 0x278   :  { %p2293_p4 = pnand %p2292_p3, %p2286_p0 }
 0x279   :  { %1644 = vmatpush1.bf16.msra.mxu0 %v2207_v44  ;;  %1687 = vmatpush1.bf16.msra.mxu1 %v2210_v45 }
 0x27a   :  { %1645 = vmatprep.subr.bf16.mxu0 %v2215_v46  ;;  %1688 = vmatprep.subr.bf16.mxu1 %v2218_v47 }
 0x27d   :  { %1646 = vmatpush1.bf16.msra.mxu0 %v2213_v48  ;;  %1689 = vmatpush1.bf16.msra.mxu1 %v2216_v49 }
 0x27e   :  { %1647 = vmatprep.subr.bf16.mxu0 %v2221_v50  ;;  %1690 = vmatprep.subr.bf16.mxu1 %v2224_v51 }
 0x281   :  { %1648 = vmatpush1.bf16.msra.mxu0 %v2219_v52  ;;  %1691 = vmatpush1.bf16.msra.mxu1 %v2222_v53  ;;  %v906_v53 = vrot.slane %v889_v34, %v337_v58 }
 0x282   :  { %1649 = vmatprep.subr.bf16.mxu0 %v2227_v54  ;;  %1692 = vmatprep.subr.bf16.mxu1 %v2230_v55 }
 0x285   :  { %1650 = vmatpush1.bf16.msra.mxu0 %v2225_v56  ;;  %1693 = vmatpush1.bf16.msra.mxu1 %v2228_v57 }
 0x286   :  { %1651 = vmatprep.subr.bf16.mxu0 %v2233_v60  ;;  %1694 = vmatprep.subr.bf16.mxu1 %v2236_v61 }
 0x289   :  { %1652 = vmatpush1.bf16.msra.mxu0 %v2231_v62  ;;  %1695 = vmatpush1.bf16.msra.mxu1 %v2234_v63 }
 0x28a   :  { %1653 = vmatprep.subr.bf16.mxu0 %v2239_v0  ;;  %1696 = vmatprep.subr.bf16.mxu1 %v2242_v1 }
 0x28d   :  { %1654 = vmatpush2.bf16.msra.mxu0 %v2237_v2  ;;  %1697 = vmatpush2.bf16.msra.mxu1 %v2240_v3 }
 0x28e   :  { %1655 = vmatprep.subr.bf16.mxu0 %v2245_v4  ;;  %1698 = vmatprep.subr.bf16.mxu1 %v2248_v5 }
 0x291   :  { %1656 = vmatpush2.bf16.msra.mxu0 %v2243_v6  ;;  %1699 = vmatpush2.bf16.msra.mxu1 %v2246_v7 }
 0x292   :  { %1657 = vmatprep.subr.bf16.mxu0 %v2251_v8  ;;  %1700 = vmatprep.subr.bf16.mxu1 %v2254_v9 }
 0x295   :  { %1658 = vmatpush2.bf16.msra.mxu0 %v2249_v10  ;;  %1701 = vmatpush2.bf16.msra.mxu1 %v2252_v11 }
 0x296   :  { %1659 = vmatprep.subr.bf16.mxu0 %v2257_v12  ;;  %1702 = vmatprep.subr.bf16.mxu1 %v2260_v13 }
 0x299   :  { %1660 = vmatpush2.bf16.msra.mxu0 %v2255_v14  ;;  %1703 = vmatpush2.bf16.msra.mxu1 %v2258_v15 }
 0x29a   :  { %1661 = vmatprep.subr.bf16.mxu0 %v2263_v16  ;;  %1704 = vmatprep.subr.bf16.mxu1 %v2266_v17 }
 0x29d   :  { %1662 = vmatpush2.bf16.msra.mxu0 %v2261_v18  ;;  %1705 = vmatpush2.bf16.msra.mxu1 %v2264_v19 }
 0x29e   :  { %1663 = vmatprep.subr.bf16.mxu0 %v2269_v20  ;;  %1706 = vmatprep.subr.bf16.mxu1 %v2272_v21 }
 0x2a1   :  { %1664 = vmatpush2.bf16.msra.mxu0 %v2267_v22  ;;  %1707 = vmatpush2.bf16.msra.mxu1 %v2270_v23 }
 0x2a2   :  { %1665 = vmatprep.subr.bf16.mxu0 %v2275_v24  ;;  %1708 = vmatprep.subr.bf16.mxu1 %v2278_v25 }
 0x2a5   :  { %1666 = vmatpush2.bf16.msra.mxu0 %v2273_v26  ;;  %1709 = vmatpush2.bf16.msra.mxu1 %v2276_v27 }
 0x2a6   :  { %1667 = vmatprep.subr.bf16.mxu0 %v2281_v28  ;;  %1710 = vmatprep.subr.bf16.mxu1 %v2284_v31 }
 0x2a9   :  { %1668 = vmatpush2.bf16.msra.mxu0 %v2279_v32  ;;  %1711 = vmatpush2.bf16.msra.mxu1 %v2282_v33 }
 0x2ac   :  { %1670 = vmatmul.mubr.bf16.vlgmr.msra.gmra.mxu0 %v2843_v29  ;;  %1713 = vmatmul.mubr.bf16.vlgmr.msra.gmra.mxu1 %v2845_v30 }
 0x32c   :  { %v1585_v40 = vpop.f32.mrf.mxu0  ;;  %v1628_v41 = vpop.f32.mrf.mxu1 }
 0x32d   :  { %v1586_v42 = vadd.f32 %v1585_v40, %v894_v38 }
 0x32e   :  { %v1587_v43 = vpop.f32.mrf.mxu0  ;;  %v1630_v44 = vpop.f32.mrf.mxu1 }
 0x32f   :  { %v1629_v45 = vadd.f32 %v1628_v41, %v1586_v42  ;;  %v1588_v46 = vadd.f32 %v1587_v43, %v898_v39 }
 0x330   :  { %v1589_v47 = vpop.f32.mrf.mxu0  ;;  %v1632_v48 = vpop.f32.mrf.mxu1 }
 0x331   :  { %1723 = vst [vmem:[#allocation2] sm:$0xff] %v1629_v45  ;;  %v1631_v29 = vadd.f32 %v1630_v44, %v1588_v46  ;;  %v1590_v30 = vadd.f32 %v1589_v47, %v894_v38 }
 0x332   :  { %v1591_v49 = vpop.f32.mrf.mxu0  ;;  %v1634_v52 = vpop.f32.mrf.mxu1 }
 0x333   :  { %1724 = vst [vmem:[#allocation2 + $0x8] sm:$0xff] %v1631_v29  ;;  %v1633_v50 = vadd.f32 %v1632_v48, %v1590_v30  ;;  %v1592_v51 = vadd.f32 %v1591_v49, %v898_v39 }
 0x335   :  { %1727 = vst [vmem:[#allocation2 + $0x20] sm:$0xff] %v1633_v50  ;;  %v1635_v37 = vadd.f32 %v1634_v52, %v1592_v51 }
 0x337   :  { %1728 = vst [vmem:[#allocation2 + $0x28] sm:$0xff] %v1635_v37 }
 0x36c   :  { %v1671_v54 = vpop.f32.mrf.mxu0  ;;  %v1714_v55 = vpop.f32.mrf.mxu1 }
 0x36d   :  { %v1672_v56 = vadd.f32 %v1671_v54, %v902_v36 }
 0x36e   :  { %v1673_v57 = vpop.f32.mrf.mxu0  ;;  %v1716_v60 = vpop.f32.mrf.mxu1 }
 0x36f   :  { %v1715_v61 = vadd.f32 %v1714_v55, %v1672_v56  ;;  %v1674_v62 = vadd.f32 %v1673_v57, %v906_v53 }
 0x370   :  { %v1675_v63 = vpop.f32.mrf.mxu0  ;;  %v1718_v0 = vpop.f32.mrf.mxu1 }
 0x371   :  { %1725 = vst [vmem:[#allocation2 + $0x10] sm:$0xff] %v1715_v61  ;;  %v1717_v1 = vadd.f32 %v1716_v60, %v1674_v62  ;;  %v1676_v2 = vadd.f32 %v1675_v63, %v902_v36 }
 0x372   :  { %v1677_v3 = vpop.f32.mrf.mxu0  ;;  %v1720_v35 = vpop.f32.mrf.mxu1 }
 0x373   :  { %1726 = vst [vmem:[#allocation2 + $0x18] sm:$0xff] %v1717_v1  ;;  %v1719_v59 = vadd.f32 %v1718_v0, %v1676_v2  ;;  %v1678_v4 = vadd.f32 %v1677_v3, %v906_v53 }
 0x375   :  { %1729 = vst [vmem:[#allocation2 + $0x30] sm:$0xff] %v1719_v59  ;;  %v1721_v58 = vadd.f32 %v1720_v35, %v1678_v4 }
 0x377   :  { %1730 = vst [vmem:[#allocation2 + $0x38] sm:$0xff] %v1721_v58 }
 0x378   :  { %2296 = shalt.err (!%p2293_p4)
}
 0x379   :  { %s2311_s18 = smov 512   ;;  %s2312_s19 = smov 32  }
 0x37a   :  { %1742 = dma.vmem_to_hbm [thread:$0]  %s1737_s8, 1024, %s3052_s9, [#allocation3], %s2311_s18, %s2311_s18, %s2312_s19  }
 0x37b   :  { %2305 = dma.done.wait [#allocation3], 1024  }
 0x37c   :  { %2306 = vsyncadd [#allocation3], 4294966272 }
 0x37d   :  { %1746 = vsyncpa [#allocation3], 1 }

</bundles_post_ra>
